<compile_context>
chip_gen: v6e
topology: v6e:2x2x1
jax: 0.10.0
libtpu: 0.0.40
codegen_flags: <defaults>
</compile_context>

<pallas_src>
import functools

import jax
import jax.numpy as jnp
from jax import lax
from jax.experimental import pallas as pl
from jax.experimental.pallas import tpu as pltpu

LRELU_SLOPE = 0.1                      # modules.LRELU_SLOPE
COMPUTE_DTYPE = jnp.bfloat16           # inter-layer activation / matmul dtype
_SUB = 16                              # time-tile granularity (bf16 sublane packing)
_VMEM_LIMIT = 32 * 1024 * 1024         # fits v7x (64 MiB) with pipelining headroom


def _r16(v):
    return ((int(v) + _SUB - 1) // _SUB) * _SUB


def _leaky(x, slope):
    return jnp.maximum(x, slope * x)


def _get_padding(k, d):
    return (k * d - d) // 2


# ----------------------------------------------------------------------------
# Generic dilated conv1d (stride 1), time-tiled, with fused leaky pre-activation,
# bias, residual adds, optional output scale and tanh.
#   out[t] = sum_k x[t + k*dilation - pad_left] * w[k] + b (+ residuals) ...
# ----------------------------------------------------------------------------
def _conv1d_kernel(*refs, K, dilation, tile, halo, slope, scale, n_res, tanh):
    xc_ref, xh_ref, w_ref, b_ref = refs[:4]
    res_refs = refs[4:4 + n_res]
    o_ref = refs[4 + n_res]
    act_ref = refs[5 + n_res]

    # Activate (f32) once and stash the contiguous [tile | halo] window in VMEM.
    xc = xc_ref[0].astype(jnp.float32)
    xh = xh_ref[0].astype(jnp.float32)
    if slope is not None:
        xc = _leaky(xc, slope)
        xh = _leaky(xh, slope)
    act_ref[pl.ds(0, tile), :] = xc.astype(act_ref.dtype)
    act_ref[pl.ds(tile, halo), :] = xh.astype(act_ref.dtype)

    cout = o_ref.shape[2]
    acc = jnp.zeros((tile, cout), jnp.float32)
    for k in range(K):                                   # static unroll, K <= 7
        win = act_ref[pl.ds(k * dilation, tile), :]      # (tile, Cin) bf16
        acc = acc + jnp.dot(win, w_ref[k],
                            preferred_element_type=jnp.float32)
    acc = acc + b_ref[...]                               # (1, Cout) broadcast, f32
    for r_ref in res_refs:                               # fused residual adds
        acc = acc + r_ref[0].astype(jnp.float32)
    if scale is not None:                                # fused xs / num_kernels
        acc = acc * scale
    if tanh:
        acc = jnp.tanh(acc)
    o_ref[0] = acc.astype(o_ref.dtype)


def conv1d_pallas(x, w, b, *, dilation=1, pad_left, t_out, leaky_slope=None,
                  residuals=(), out_scale=None, tanh_post=False,
                  out_dtype=COMPUTE_DTYPE):
    """x: (B, T, Cin), w: (K, Cin, Cout), b: (Cout,) -> (B, t_out, Cout)."""
    B, T, Cin = x.shape
    K, _, Cout = w.shape
    H = dilation * (K - 1)
    n_res = len(residuals)

    # Time-tile sized so (x + act scratch + out + acc + residuals) stays well
    # under the v7x 64 MiB / v5e scoped-VMEM budgets with double buffering.
    bytes_per_row = Cin * 2 * 3 + Cout * (2 * 2 + 4 + 4 * n_res)
    cap = max(64, min(512, (6 * 1024 * 1024) // max(bytes_per_row, 1)))
    cap = max(_SUB, (cap // _SUB) * _SUB)
    tile = min(cap, _r16(t_out))
    tile = max(tile, _r16(max(H, 1)))
    halo = _r16(max(H, 1))
    while tile % halo:
        halo += _SUB
    nt = pl.cdiv(t_out, tile)
    ratio = tile // halo
    L = (nt + 1) * tile                  # padded time length (room for halo)

    right_pad = L - pad_left - T
    assert right_pad >= 0
    x_work = jnp.pad(x.astype(COMPUTE_DTYPE),
                     ((0, 0), (pad_left, right_pad), (0, 0)))
    w_c = w.astype(COMPUTE_DTYPE)
    b_c = b.reshape(1, Cout).astype(jnp.float32)
    res_c = tuple(r.astype(COMPUTE_DTYPE) for r in residuals)

    kernel = functools.partial(
        _conv1d_kernel, K=K, dilation=dilation, tile=tile, halo=halo,
        slope=leaky_slope, scale=out_scale, n_res=n_res, tanh=tanh_post)

    in_specs = [
        pl.BlockSpec((1, tile, Cin), lambda bi, ti: (bi, ti, 0)),
        pl.BlockSpec((1, halo, Cin),
                     lambda bi, ti, _r=ratio: (bi, (ti + 1) * _r, 0)),
        pl.BlockSpec((K, Cin, Cout), lambda bi, ti: (0, 0, 0)),
        pl.BlockSpec((1, Cout), lambda bi, ti: (0, 0)),
    ]
    for _ in residuals:
        in_specs.append(pl.BlockSpec((1, tile, Cout),
                                     lambda bi, ti: (bi, ti, 0)))

    return pl.pallas_call(
        kernel,
        out_shape=jax.ShapeDtypeStruct((B, t_out, Cout), out_dtype),
        grid=(B, nt),
        in_specs=in_specs,
        out_specs=pl.BlockSpec((1, tile, Cout), lambda bi, ti: (bi, ti, 0)),
        scratch_shapes=[pltpu.VMEM((tile + halo, Cin), COMPUTE_DTYPE)],
        compiler_params=pltpu.CompilerParams(
            dimension_semantics=("parallel", "parallel"),
            vmem_limit_bytes=_VMEM_LIMIT),
    )(x_work, x_work, w_c, b_c, *res_c)


# ----------------------------------------------------------------------------
# conv_post (Cout == 1): lane-dense kernel.  Each tap is an NT matmul
# (1, Cin) x (tile, Cin)^T -> (1, tile), so the result (and its store) puts the
# time axis on the 128-lane axis and the output is produced directly in NCT.
# ----------------------------------------------------------------------------
def _conv_post_kernel(xc_ref, xh_ref, w_ref, o_ref, act_ref, *, K, tile, halo,
                      slope):
    xc = _leaky(xc_ref[0].astype(jnp.float32), slope)
    xh = _leaky(xh_ref[0].astype(jnp.float32), slope)
    act_ref[pl.ds(0, tile), :] = xc.astype(act_ref.dtype)
    act_ref[pl.ds(tile, halo), :] = xh.astype(act_ref.dtype)

    nt_dims = (((1,), (1,)), ((), ()))            # contract Cin of both (A @ B^T)
    acc = jnp.zeros((1, tile), jnp.float32)
    for k in range(K):
        win = act_ref[pl.ds(k, tile), :]          # (tile, Cin)
        acc = acc + lax.dot_general(w_ref[k], win, nt_dims,
                                    preferred_element_type=jnp.float32)
    o_ref[0] = jnp.tanh(acc).astype(o_ref.dtype)  # lane-dense (1, tile) store


def conv_post_pallas(x, w, *, leaky_slope=0.01, out_dtype=jnp.float32):
    """x: (B, T, Cin), w: (K, Cin, 1) -> (B, 1, T) with fused leaky + tanh."""
    B, T, Cin = x.shape
    K = w.shape[0]
    pad_left = (K - 1) // 2
    t_out = T
    H = K - 1

    if t_out % 128 == 0:
        tile = min(1024, t_out)
    elif t_out % _SUB == 0 and t_out <= 8192:
        tile = t_out                               # single tile == full extent
    else:
        tile = 0                                   # fall back below

    halo = _r16(max(H, 1))
    if tile == 0 or halo > tile:
        # Rare shapes: generic kernel (Cout=1) + NCT transpose in the wrapper.
        y = conv1d_pallas(x, w, jnp.zeros((1,), jnp.float32), dilation=1,
                          pad_left=pad_left, t_out=t_out,
                          leaky_slope=leaky_slope, tanh_post=True,
                          out_dtype=out_dtype)
        return jnp.transpose(y, (0, 2, 1))
    while tile % halo:
        halo += _SUB

    nt = pl.cdiv(t_out, tile)
    ratio = tile // halo
    L = (nt + 1) * tile
    x_work = jnp.pad(x.astype(COMPUTE_DTYPE),
                     ((0, 0), (pad_left, L - pad_left - T), (0, 0)))
    w_t = jnp.transpose(w, (0, 2, 1)).astype(COMPUTE_DTYPE)   # (K, 1, Cin)

    kernel = functools.partial(_conv_post_kernel, K=K, tile=tile, halo=halo,
                               slope=leaky_slope)
    return pl.pallas_call(
        kernel,
        out_shape=jax.ShapeDtypeStruct((B, 1, t_out), out_dtype),
        grid=(B, nt),
        in_specs=[
            pl.BlockSpec((1, tile, Cin), lambda bi, ti: (bi, ti, 0)),
            pl.BlockSpec((1, halo, Cin),
                         lambda bi, ti, _r=ratio: (bi, (ti + 1) * _r, 0)),
            pl.BlockSpec((K, 1, Cin), lambda bi, ti: (0, 0, 0)),
        ],
        out_specs=pl.BlockSpec((1, 1, tile), lambda bi, ti: (bi, 0, ti)),
        scratch_shapes=[pltpu.VMEM((tile + halo, Cin), COMPUTE_DTYPE)],
        compiler_params=pltpu.CompilerParams(
            dimension_semantics=("parallel", "parallel"),
            vmem_limit_bytes=_VMEM_LIMIT),
    )(x_work, x_work, w_t)


# ----------------------------------------------------------------------------
# Polyphase decomposition of ConvTranspose1d (no zero-stuffing): each output
# phase r in [0, stride) is a small dense conv over the un-stuffed input; all
# phases are packed into one conv with Cout' = stride*Cout and the interleave
# is a free row-major reshape.
# ----------------------------------------------------------------------------
def _build_polyphase(w_t, b, stride, padding):
    """w_t: PyTorch ConvTranspose1d weight (Cin, Cout, K) -> (Kp, Cin, s*Cout)."""
    cin, cout, K = w_t.shape
    s, p = int(stride), int(padding)
    o_min = -((s - 1 + p) // s)
    o_max = (K - 1 - p) // s
    kp = o_max - o_min + 1
    taps = []
    for kc in range(kp):                      # conv-tap order (already flipped)
        o = o_max - kc
        phase_cols = []
        for r in range(s):
            kk = o * s + r + p
            if 0 <= kk < K:
                phase_cols.append(w_t[:, :, kk])
            else:
                phase_cols.append(jnp.zeros((cin, cout), w_t.dtype))
        taps.append(jnp.concatenate(phase_cols, axis=1))   # (Cin, s*Cout)
    w_conv = jnp.stack(taps, axis=0)                        # (Kp, Cin, s*Cout)
    b_conv = jnp.tile(b, (s,))                              # (s*Cout,)
    return w_conv, b_conv, o_max


# ----------------------------------------------------------------------------
# Generator (forward only; weight_norm is a reparameterization that does not
# change forward semantics, so plain weights are used).
# ----------------------------------------------------------------------------
class Generator:
    def __init__(self, initial_channel, resblock, resblock_kernel_sizes,
                 resblock_dilation_sizes, upsample_rates,
                 upsample_initial_channel, upsample_kernel_sizes,
                 gin_channels=0, *, key):
        self.num_kernels = len(resblock_kernel_sizes)
        self.num_upsamples = len(upsample_rates)
        self.resblock_kind = resblock
        self.resblock_kernel_sizes = resblock_kernel_sizes
        self.resblock_dilation_sizes = resblock_dilation_sizes
        self.upsample_rates = upsample_rates
        self.upsample_kernel_sizes = upsample_kernel_sizes
        self.gin_channels = gin_channels

        keys = iter(jax.random.split(key, 512))

        def nrm(shape, scale=0.05):
            return (scale * jax.random.normal(next(keys), shape)).astype(
                jnp.float32)

        p = {}
        p["conv_pre_w"] = nrm((7, initial_channel, upsample_initial_channel))
        p["conv_pre_b"] = nrm((upsample_initial_channel,))

        p["ups"] = []
        for i, (u, k) in enumerate(zip(upsample_rates, upsample_kernel_sizes)):
            cin = upsample_initial_channel // (2 ** i)
            cout = upsample_initial_channel // (2 ** (i + 1))
            w_t = nrm((cin, cout, k))            # PyTorch ConvTranspose1d layout
            b_t = nrm((cout,))
            w_poly, b_poly, o_max = _build_polyphase(w_t, b_t, u, (k - u) // 2)
            p["ups"].append({"w": w_poly, "b": b_poly, "o_max": o_max})

        p["resblocks"] = []
        ch = upsample_initial_channel
        for i in range(self.num_upsamples):
            ch = upsample_initial_channel // (2 ** (i + 1))
            for k, d in zip(resblock_kernel_sizes, resblock_dilation_sizes):
                if resblock == "1":
                    rb = {"c1_w": [nrm((k, ch, ch)) for _ in d],
                          "c1_b": [nrm((ch,)) for _ in d],
                          "c2_w": [nrm((k, ch, ch)) for _ in d],
                          "c2_b": [nrm((ch,)) for _ in d]}
                else:
                    rb = {"c_w": [nrm((k, ch, ch)) for _ in d],
                          "c_b": [nrm((ch,)) for _ in d]}
                p["resblocks"].append(rb)

        p["conv_post_w"] = nrm((7, ch, 1))       # bias=False in the reference
        if gin_channels != 0:
            p["cond_w"] = nrm((1, gin_channels, upsample_initial_channel))
            p["cond_b"] = nrm((upsample_initial_channel,))
        self.params = p

    def __call__(self, x_nct, g=None):
        """x_nct: (B, C_in, T) like PyTorch; returns (B, 1, T * prod(rates))."""
        p = self.params
        x = jnp.transpose(x_nct, (0, 2, 1)).astype(COMPUTE_DTYPE)   # (B, T, C)
        B, T, _ = x.shape

        x = conv1d_pallas(x, p["conv_pre_w"], p["conv_pre_b"],
                          dilation=1, pad_left=3, t_out=T)
        if g is not None:
            gt = jnp.transpose(g, (0, 2, 1)).astype(COMPUTE_DTYPE)
            # 1x1 cond conv with the "+ conv_pre(x)" add fused as a residual.
            x = conv1d_pallas(gt, p["cond_w"], p["cond_b"], dilation=1,
                              pad_left=0, t_out=gt.shape[1], residuals=(x,))

        for i in range(self.num_upsamples):
            s = self.upsample_rates[i]
            ku = self.upsample_kernel_sizes[i]
            pad_u = (ku - s) // 2
            up = p["ups"][i]
            T_cur = x.shape[1]
            T_up = (T_cur - 1) * s - 2 * pad_u + ku
            M = -(-T_up // s)
            cout_up = up["w"].shape[2] // s

            # F.leaky_relu fused as the pre-activation of the polyphase conv.
            y = conv1d_pallas(x, up["w"], up["b"], dilation=1,
                              pad_left=up["o_max"], t_out=M,
                              leaky_slope=LRELU_SLOPE)
            y = y.reshape(B, M * s, cout_up)         # free phase interleave
            if M * s != T_up:
                y = y[:, :T_up, :]
            x = y
            T_cur = T_up

            xs = None
            for j in range(self.num_kernels):
                rb = p["resblocks"][i * self.num_kernels + j]
                kr = self.resblock_kernel_sizes[j]
                dr = self.resblock_dilation_sizes[j]
                last_rb = (j == self.num_kernels - 1)
                cur = x
                for si, d in enumerate(dr):
                    last_stage = (si == len(dr) - 1)
                    res_list = [cur]                  # per-stage residual
                    if last_stage and xs is not None:
                        res_list.append(xs)           # fused xs accumulation
                    scale = (1.0 / self.num_kernels
                             if (last_stage and last_rb
                                 and self.num_kernels > 1) else None)
                    if self.resblock_kind == "1":
                        xt = conv1d_pallas(cur, rb["c1_w"][si], rb["c1_b"][si],
                                           dilation=d,
                                           pad_left=_get_padding(kr, d),
                                           t_out=T_cur,
                                           leaky_slope=LRELU_SLOPE)
                        cur = conv1d_pallas(xt, rb["c2_w"][si], rb["c2_b"][si],
                                            dilation=1,
                                            pad_left=_get_padding(kr, 1),
                                            t_out=T_cur,
                                            leaky_slope=LRELU_SLOPE,
                                            residuals=tuple(res_list),
                                            out_scale=scale)
                    else:
                        cur = conv1d_pallas(cur, rb["c_w"][si], rb["c_b"][si],
                                            dilation=d,
                                            pad_left=_get_padding(kr, d),
                                            t_out=T_cur,
                                            leaky_slope=LRELU_SLOPE,
                                            residuals=tuple(res_list),
                                            out_scale=scale)
                xs = cur
            x = xs

        # Final leaky (PyTorch default slope 0.01) + bias-free conv_post + tanh,
        # produced lane-dense directly in NCT layout.
        return conv_post_pallas(x, p["conv_post_w"], leaky_slope=0.01)


if __name__ == "__main__":
    key = jax.random.PRNGKey(0)
    k_param, k_x = jax.random.split(key)

    # Small config consistent with the module's __init__.
    initial_channel = 8
    upsample_initial_channel = 32
    upsample_rates = [2, 2]
    upsample_kernel_sizes = [4, 4]
    resblock_kernel_sizes = [3, 5]
    resblock_dilation_sizes = [[1, 3, 5], [1, 3, 5]]

    gen = Generator(initial_channel, "1", resblock_kernel_sizes,
                    resblock_dilation_sizes, upsample_rates,
                    upsample_initial_channel, upsample_kernel_sizes,
                    gin_channels=0, key=k_param)

    B, T = 2, 16
    x = jax.random.normal(k_x, (B, initial_channel, T), dtype=jnp.float32)

    y = gen(x)                     # (B, 1, T * prod(upsample_rates)) = (2, 1, 64)
    jax.block_until_ready(y)
    assert y.shape == (B, 1, T * 4), y.shape
    print("KERNEL_OK")
</pallas_src>

<mosaic_0001>
module attributes {stable_mosaic.version = 11 : i64} {
  func.func @_conv1d_kernel(%arg0: i32, %arg1: i32, %arg2: memref<1x16x8xbf16, #tpu.memory_space<vmem>>, %arg3: memref<1x16x8xbf16, #tpu.memory_space<vmem>>, %arg4: memref<7x8x32xbf16, #tpu.memory_space<vmem>>, %arg5: memref<1x32xf32, #tpu.memory_space<vmem>>, %arg6: memref<1x16x32xbf16, #tpu.memory_space<vmem>>, %arg7: memref<32x8xbf16, #tpu.memory_space<vmem>>) attributes {dimension_semantics = [#tpu.dimension_semantics<parallel>, #tpu.dimension_semantics<parallel>], iteration_bounds = array<i64: 2, 1>, scalar_prefetch = 0 : i64, scratch_operands = 1 : i64, tpu.core_type = #tpu.core_type<tc>, window_params = [{transform_indices = @transform_0, window_bounds = array<i64: 1, 16, 8>}, {transform_indices = @transform_1, window_bounds = array<i64: 1, 16, 8>}, {pipeline_mode = #tpu.pipeline_mode<synchronous>, transform_indices = @transform_2, window_bounds = array<i64: 7, 8, 32>}, {pipeline_mode = #tpu.pipeline_mode<synchronous>, transform_indices = @transform_3, window_bounds = array<i64: 1, 32>}, {transform_indices = @transform_4, window_bounds = array<i64: 1, 16, 32>}]} {
    %c0 = arith.constant 0 : index
    %c0_0 = arith.constant 0 : index
    %c0_1 = arith.constant 0 : index
    %0 = vector.load %arg2[%c0, %c0_0, %c0_1] : memref<1x16x8xbf16, #tpu.memory_space<vmem>>, vector<1x16x8xbf16>
    %1 = vector.shape_cast %0 : vector<1x16x8xbf16> to vector<16x8xbf16>
    %2 = arith.extf %1 : vector<16x8xbf16> to vector<16x8xf32>
    %c0_2 = arith.constant 0 : index
    %c0_3 = arith.constant 0 : index
    %c0_4 = arith.constant 0 : index
    %3 = vector.load %arg3[%c0_2, %c0_3, %c0_4] : memref<1x16x8xbf16, #tpu.memory_space<vmem>>, vector<1x16x8xbf16>
    %4 = vector.shape_cast %3 : vector<1x16x8xbf16> to vector<16x8xbf16>
    %5 = arith.extf %4 : vector<16x8xbf16> to vector<16x8xf32>
    %6 = arith.truncf %2 : vector<16x8xf32> to vector<16x8xbf16>
    %c0_5 = arith.constant 0 : index
    %c0_6 = arith.constant 0 : index
    %7 = vector.load %arg7[%c0_5, %c0_6] : memref<32x8xbf16, #tpu.memory_space<vmem>>, vector<16x8xbf16>
    tpu.vector_store %arg7[%c0_5, %c0_6], %6 {strides = array<i32>} : memref<32x8xbf16, #tpu.memory_space<vmem>>, vector<16x8xbf16>,
    %8 = arith.truncf %5 : vector<16x8xf32> to vector<16x8xbf16>
    %c16 = arith.constant 16 : index
    %c0_7 = arith.constant 0 : index
    %9 = vector.load %arg7[%c16, %c0_7] : memref<32x8xbf16, #tpu.memory_space<vmem>>, vector<16x8xbf16>
    tpu.vector_store %arg7[%c16, %c0_7], %8 {strides = array<i32>} : memref<32x8xbf16, #tpu.memory_space<vmem>>, vector<16x8xbf16>,
    %cst = arith.constant 0.000000e+00 : f32
    %10 = vector.broadcast %cst : f32 to vector<16x32xf32>
    %c0_8 = arith.constant 0 : index
    %c0_9 = arith.constant 0 : index
    %11 = vector.load %arg7[%c0_8, %c0_9] : memref<32x8xbf16, #tpu.memory_space<vmem>>, vector<16x8xbf16>
    %c0_10 = arith.constant 0 : index
    %c0_11 = arith.constant 0 : index
    %c0_12 = arith.constant 0 : index
    %12 = vector.load %arg4[%c0_10, %c0_11, %c0_12] : memref<7x8x32xbf16, #tpu.memory_space<vmem>>, vector<1x8x32xbf16>
    %13 = vector.shape_cast %12 : vector<1x8x32xbf16> to vector<8x32xbf16>
    %cst_13 = arith.constant dense<0.000000e+00> : vector<16x32xf32>
    %14 = tpu.matmul %11, %13, %cst_13 {dimension_numbers = #tpu.dot_dimension_numbers<[1], [0], [0], [1], [0, 0, 1, 1], [], []>} : vector<16x8xbf16>, vector<8x32xbf16>, vector<16x32xf32> -> vector<16x32xf32>
    %15 = arith.addf %10, %14 : vector<16x32xf32>
    %c1 = arith.constant 1 : index
    %c0_14 = arith.constant 0 : index
    %16 = vector.load %arg7[%c1, %c0_14] : memref<32x8xbf16, #tpu.memory_space<vmem>>, vector<16x8xbf16>
    %c1_15 = arith.constant 1 : index
    %c0_16 = arith.constant 0 : index
    %c0_17 = arith.constant 0 : index
    %17 = vector.load %arg4[%c1_15, %c0_16, %c0_17] : memref<7x8x32xbf16, #tpu.memory_space<vmem>>, vector<1x8x32xbf16>
    %18 = vector.shape_cast %17 : vector<1x8x32xbf16> to vector<8x32xbf16>
    %cst_18 = arith.constant dense<0.000000e+00> : vector<16x32xf32>
    %19 = tpu.matmul %16, %18, %cst_18 {dimension_numbers = #tpu.dot_dimension_numbers<[1], [0], [0], [1], [0, 0, 1, 1], [], []>} : vector<16x8xbf16>, vector<8x32xbf16>, vector<16x32xf32> -> vector<16x32xf32>
    %20 = arith.addf %15, %19 : vector<16x32xf32>
    %c2 = arith.constant 2 : index
    %c0_19 = arith.constant 0 : index
    %21 = vector.load %arg7[%c2, %c0_19] : memref<32x8xbf16, #tpu.memory_space<vmem>>, vector<16x8xbf16>
    %c2_20 = arith.constant 2 : index
    %c0_21 = arith.constant 0 : index
    %c0_22 = arith.constant 0 : index
    %22 = vector.load %arg4[%c2_20, %c0_21, %c0_22] : memref<7x8x32xbf16, #tpu.memory_space<vmem>>, vector<1x8x32xbf16>
    %23 = vector.shape_cast %22 : vector<1x8x32xbf16> to vector<8x32xbf16>
    %cst_23 = arith.constant dense<0.000000e+00> : vector<16x32xf32>
    %24 = tpu.matmul %21, %23, %cst_23 {dimension_numbers = #tpu.dot_dimension_numbers<[1], [0], [0], [1], [0, 0, 1, 1], [], []>} : vector<16x8xbf16>, vector<8x32xbf16>, vector<16x32xf32> -> vector<16x32xf32>
    %25 = arith.addf %20, %24 : vector<16x32xf32>
    %c3 = arith.constant 3 : index
    %c0_24 = arith.constant 0 : index
    %26 = vector.load %arg7[%c3, %c0_24] : memref<32x8xbf16, #tpu.memory_space<vmem>>, vector<16x8xbf16>
    %c3_25 = arith.constant 3 : index
    %c0_26 = arith.constant 0 : index
    %c0_27 = arith.constant 0 : index
    %27 = vector.load %arg4[%c3_25, %c0_26, %c0_27] : memref<7x8x32xbf16, #tpu.memory_space<vmem>>, vector<1x8x32xbf16>
    %28 = vector.shape_cast %27 : vector<1x8x32xbf16> to vector<8x32xbf16>
    %cst_28 = arith.constant dense<0.000000e+00> : vector<16x32xf32>
    %29 = tpu.matmul %26, %28, %cst_28 {dimension_numbers = #tpu.dot_dimension_numbers<[1], [0], [0], [1], [0, 0, 1, 1], [], []>} : vector<16x8xbf16>, vector<8x32xbf16>, vector<16x32xf32> -> vector<16x32xf32>
    %30 = arith.addf %25, %29 : vector<16x32xf32>
    %c4 = arith.constant 4 : index
    %c0_29 = arith.constant 0 : index
    %31 = vector.load %arg7[%c4, %c0_29] : memref<32x8xbf16, #tpu.memory_space<vmem>>, vector<16x8xbf16>
    %c4_30 = arith.constant 4 : index
    %c0_31 = arith.constant 0 : index
    %c0_32 = arith.constant 0 : index
    %32 = vector.load %arg4[%c4_30, %c0_31, %c0_32] : memref<7x8x32xbf16, #tpu.memory_space<vmem>>, vector<1x8x32xbf16>
    %33 = vector.shape_cast %32 : vector<1x8x32xbf16> to vector<8x32xbf16>
    %cst_33 = arith.constant dense<0.000000e+00> : vector<16x32xf32>
    %34 = tpu.matmul %31, %33, %cst_33 {dimension_numbers = #tpu.dot_dimension_numbers<[1], [0], [0], [1], [0, 0, 1, 1], [], []>} : vector<16x8xbf16>, vector<8x32xbf16>, vector<16x32xf32> -> vector<16x32xf32>
    %35 = arith.addf %30, %34 : vector<16x32xf32>
    %c5 = arith.constant 5 : index
    %c0_34 = arith.constant 0 : index
    %36 = vector.load %arg7[%c5, %c0_34] : memref<32x8xbf16, #tpu.memory_space<vmem>>, vector<16x8xbf16>
    %c5_35 = arith.constant 5 : index
    %c0_36 = arith.constant 0 : index
    %c0_37 = arith.constant 0 : index
    %37 = vector.load %arg4[%c5_35, %c0_36, %c0_37] : memref<7x8x32xbf16, #tpu.memory_space<vmem>>, vector<1x8x32xbf16>
    %38 = vector.shape_cast %37 : vector<1x8x32xbf16> to vector<8x32xbf16>
    %cst_38 = arith.constant dense<0.000000e+00> : vector<16x32xf32>
    %39 = tpu.matmul %36, %38, %cst_38 {dimension_numbers = #tpu.dot_dimension_numbers<[1], [0], [0], [1], [0, 0, 1, 1], [], []>} : vector<16x8xbf16>, vector<8x32xbf16>, vector<16x32xf32> -> vector<16x32xf32>
    %40 = arith.addf %35, %39 : vector<16x32xf32>
    %c6 = arith.constant 6 : index
    %c0_39 = arith.constant 0 : index
    %41 = vector.load %arg7[%c6, %c0_39] : memref<32x8xbf16, #tpu.memory_space<vmem>>, vector<16x8xbf16>
    %c6_40 = arith.constant 6 : index
    %c0_41 = arith.constant 0 : index
    %c0_42 = arith.constant 0 : index
    %42 = vector.load %arg4[%c6_40, %c0_41, %c0_42] : memref<7x8x32xbf16, #tpu.memory_space<vmem>>, vector<1x8x32xbf16>
    %43 = vector.shape_cast %42 : vector<1x8x32xbf16> to vector<8x32xbf16>
    %cst_43 = arith.constant dense<0.000000e+00> : vector<16x32xf32>
    %44 = tpu.matmul %41, %43, %cst_43 {dimension_numbers = #tpu.dot_dimension_numbers<[1], [0], [0], [1], [0, 0, 1, 1], [], []>} : vector<16x8xbf16>, vector<8x32xbf16>, vector<16x32xf32> -> vector<16x32xf32>
    %45 = arith.addf %40, %44 : vector<16x32xf32>
    %c0_44 = arith.constant 0 : index
    %c0_45 = arith.constant 0 : index
    %46 = vector.load %arg5[%c0_44, %c0_45] : memref<1x32xf32, #tpu.memory_space<vmem>>, vector<1x32xf32>
    %47 = vector.broadcast %46 : vector<1x32xf32> to vector<16x32xf32>
    %48 = arith.addf %45, %47 : vector<16x32xf32>
    %49 = arith.truncf %48 : vector<16x32xf32> to vector<16x32xbf16>
    %c0_46 = arith.constant 0 : index
    %c0_47 = arith.constant 0 : index
    %c0_48 = arith.constant 0 : index
    %50 = vector.load %arg6[%c0_46, %c0_47, %c0_48] : memref<1x16x32xbf16, #tpu.memory_space<vmem>>, vector<1x16x32xbf16>
    %51 = vector.shape_cast %50 : vector<1x16x32xbf16> to vector<16x32xbf16>
    %52 = vector.shape_cast %49 : vector<16x32xbf16> to vector<1x16x32xbf16>
    tpu.vector_store %arg6[%c0_46, %c0_47, %c0_48], %52 {strides = array<i32>} : memref<1x16x32xbf16, #tpu.memory_space<vmem>>, vector<1x16x32xbf16>,
    return
  }
  func.func @transform_0(%arg0: i32, %arg1: i32) -> (i32, i32, i32) {
    %c0_i32 = arith.constant 0 : i32
    %c0_i32_0 = arith.constant 0 : i32
    return %arg0, %arg1, %c0_i32 : i32, i32, i32
  }
  func.func @transform_1(%arg0: i32, %arg1: i32) -> (i32, i32, i32) {
    %c1_i32 = arith.constant 1 : i32
    %0 = arith.addi %arg1, %c1_i32 : i32
    %c1_i32_0 = arith.constant 1 : i32
    %1 = arith.muli %0, %c1_i32_0 : i32
    %c0_i32 = arith.constant 0 : i32
    %c0_i32_1 = arith.constant 0 : i32
    return %arg0, %1, %c0_i32 : i32, i32, i32
  }
  func.func @transform_2(%arg0: i32, %arg1: i32) -> (i32, i32, i32) {
    %c0_i32 = arith.constant 0 : i32
    %c0_i32_0 = arith.constant 0 : i32
    %c0_i32_1 = arith.constant 0 : i32
    %c0_i32_2 = arith.constant 0 : i32
    return %c0_i32, %c0_i32_0, %c0_i32_1 : i32, i32, i32
  }
  func.func @transform_3(%arg0: i32, %arg1: i32) -> (i32, i32) {
    %c0_i32 = arith.constant 0 : i32
    %c0_i32_0 = arith.constant 0 : i32
    %c0_i32_1 = arith.constant 0 : i32
    return %c0_i32, %c0_i32_0 : i32, i32
  }
  func.func @transform_4(%arg0: i32, %arg1: i32) -> (i32, i32, i32) {
    %c0_i32 = arith.constant 0 : i32
    %c0_i32_0 = arith.constant 0 : i32
    return %arg0, %arg1, %c0_i32 : i32, i32, i32
  }
}

</mosaic_0001>

<bundles_post_ra>
// kernel: tpu_custom_call.1
= control target key start
LH: loop header
LB: loop body
LE: loop exit
PB: predicated region body
PF: predicated region fallthrough
CT: control target
= control target key end

     0   :  { %9 = vsyncpa [#allocation4], 0  ;;  %s1321_s0 = inlined_call_operand.vmem [shape: bf16[2,32,8], index: 0, kind: input, shape index: {}]   ;;  %s1322_s1 = inlined_call_operand.vmem [shape: bf16[2,32,8], index: 1, kind: input, shape index: {}]   ;;  %s1323_s2 = inlined_call_operand.vmem [shape: bf16[7,8,32], index: 2, kind: input, shape index: {}]   ;;  %s1324_s3 = inlined_call_operand.vmem [shape: f32[1,32], index: 3, kind: input, shape index: {}]   ;;  %s1325_s4 = inlined_call_operand.hbm [shape: bf16[2,16,32], index: 4, kind: output, shape index: {}]  }
   0x1   :  { %11 = vsyncpa [#allocation4 + $0x1], 0  ;;  %s1133_s15 = smov 0   ;;  %s1135_s16 = smov 0  }
   0x2   :  { %s1137_s17 = smov 0   ;;  %s1139_s18 = smov 0  }
   0x3   :  { %s1141_s19 = smov 0   ;;  %s1143_s20 = smov 0  }
   0x4 LB: > { %s858_s21 = sadd.s32 4294967295, %s1101_s20   ;;  %s859_s22 = sadd.s32 4294967294, %s1101_s20   ;;  %s1101_s20 = sphi %s1143_s20, %s17_s20   ;;  %s1097_s19 = sphi %s1141_s19, %s1332_s19   ;;  %s1093_s18 = sphi %s1139_s18, %s1331_s18   ;;  %s1089_s17 = sphi %s1137_s17, %s1330_s17   ;;  %s1085_s16 = sphi %s1135_s16, %s1329_s16   ;;  %s1081_s15 = sphi %s1133_s15, %s1328_s15  }
   0x5   : > { %s29_s23 = sadd.s32 1, %s1097_s19  ;;  %s138_s24 = sadd.s32 1, %s1089_s17 }
   0x6   : > { %p31_p0 = scmp.ge.s32.totalorder %s29_s23, 2  ;;  %p148_p1 = scmp.ne.s32.totalorder %s1089_s17, %s1085_s16 }
   0x7   : > { %p149_p2 = scmp.eq.s32.totalorder %s858_s21, 1  ;;  %p154_p3 = scmp.ne.s32.totalorder %s1085_s16, %s1081_s15 }
   0x8   : > { %s1334_s23 = smov (%p31_p0, %s29_s23), 0  ;;  %p155_p5 = scmp.eq.s32.totalorder %s859_s22, 1 }
   0x9   : > { %p1173_p4 = por %p149_p2, %p148_p1  ;;  %s133_s26 = ssub.s32 %s1097_s19, %s1334_s23 }
   0xa   : > { %p862_p6 = scmp.ge.s32.totalorder %s1101_s20, 1  ;;  %p136_p7 = scmp.eq.s32.totalorder %s133_s26, 0 }
   0xb   : > { %p1180_p8 = por %p155_p5, %p154_p3  ;;  %p207_p9 = scmp.lt.s32.totalorder %s1101_s20, 3 }
   0xc   : > { %s1186_s28 = scalar_select %p136_p7, %s1089_s17, %s138_s24  }
   0xd   : > { %p208_p10 = pnand %p862_p6, %p207_p9 }
   0xe   : > { %p248_p11 = scmp.lt.s32.totalorder (!%p208_p10), %s1093_s18, 1  ;;  %s244_s10 = sand.u32 (!%p208_p10), 1, %s1085_s16  }
   0xf   : > { %211 = sbr.rel (%p208_p10) target bundleno = 284 (0x11c), region = 36  ;;  %s863_s13 = sshll.u32 (!%p208_p10), %s244_s10, 3 }
  0x10   : > { %s901_s14 = sshll.u32 (!%p208_p10), %s1093_s18, 7  ;;  %s1276_s30 = scalar_lea.sflag (!%p208_p10), [#allocation4], %s244_s10 }
  0x11   : > { %s1272_s29 = scalar_lea.hbm (!%p208_p10), %s1325_s4, %s901_s14  ;;  %s1105_s5 = smov (!%p208_p10), [#allocation3]  }
  0x12   : > { %s1029_s6 = sshll.u32 (!%p208_p10), %s1105_s5, 4  ;;  %s1030_s6 = int_to_ptr.vmem [resolvable:$false] %s1029_s6 }
  0x14   : > { %v868_v0 = vld [vmem:[%s1323_s2 + $0x4] sm:$0xf]  ;;  %vm311_vm0 = vcmask 1043456   ;;  %v282_v1 = vld [vmem:[%s1323_s2] sm:$0xf]  ;;  %v1103_v2 = vmov 0.0  }
  0x15   : > { %917 = vmatprep.subr.bf16.mxu0 %v1103_v2  ;;  %v313_v3 = vsel %vm311_vm0, %v868_v0, 0  ;;  %923 = vmatprep.subr.bf16.mxu1 %v1103_v2  ;;  %v359_v4 = vsel %vm311_vm0, %v282_v1, 0  ;;  %vm1104_vm1 = vmmov 0   ;;  %s249_s7 = scalar_select %p248_p11, %s1093_s18, 1  ;;  %vm275_vm2 = vcmask 60416  }
  0x16   : > { %918 = vmatpush3.bf16.msra.mxu0 %v313_v3  ;;  %924 = vmatpush3.bf16.msra.mxu1 %v359_v4  ;;  %v876_v8 = vld [vmem:[%s1323_s2 + $0xc] sm:$0xf]  ;;  %vm307_vm3 = vcmask 64512   ;;  %v873_v16 = vld [vmem:[%s1323_s2 + $0x8] sm:$0xf]  ;;  %vm408_vm6 = vcmask 1046528  }
  0x17   : > { %919 = vmatprep.mubr.msk.bf16.mxu0 %vm1104_vm1, %v1103_v2  ;;  %925 = vmatprep.mubr.msk.bf16.mxu1 %vm1104_vm1, %v1103_v2  ;;  %s896_s8 = sshll.u32 %s249_s7, 4  ;;  %v489_v14 = vsel %vm311_vm0, %v876_v8, 0  ;;  %vm294_vm4 = vsmask.f32 7424  ;;  %v416_v34 = vsel %vm311_vm0, %v873_v16, 0  ;;  %vm540_vm8 = vcmask 1045504  }
  0x18   : > { %929 = vmatprep.subr.bf16.mxu0 %v1103_v2  ;;  %935 = vmatprep.subr.bf16.mxu1 %v1103_v2  ;;  %s255_s11 = scalar_lea.vmem %s1321_s0, %s896_s8  ;;  %s898_s12 = sadd.s32 8, %s896_s8  ;;  %vm467_vm5 = vsmask.f32 6400  ;;  %v882_v36 = vld [vmem:[%s1323_s2 + $0x14] sm:$0xf]  ;;  %vm672_vm9 = vcmask 1044480  }
  0x19   : > { %s266_s21 = scalar_lea.vmem %s1322_s1, %s898_s12  ;;  %v271_v5 = vld [vmem:[%s255_s11] sm:$0xf]  ;;  %v272_v6 = vld [vmem:[%s255_s11 + $0x4] sm:$0xf]  ;;  %v621_v44 = vsel %vm311_vm0, %v882_v36, 0  ;;  %vm742_vm10 = vcmask 257024  }
  0x1a   : > { %v273_v7 = vld [vmem:[%s266_s21] sm:$0xf]  ;;  %276 = vst.msk [vmem:[#allocation2] sm:$0xf] %vm275_vm2, %v271_v5  ;;  %277 = vst.msk [vmem:[#allocation2 + $0x4] sm:$0xf] %vm275_vm2, %v272_v6 }
  0x1b   : > { %278 = vst.msk [vmem:[#allocation2 + $0x8] sm:$0xf] %vm275_vm2, %v273_v7  ;;  %v879_v52 = vld [vmem:[%s1323_s2 + $0x10] sm:$0xf]  ;;  %vm599_vm7 = vsmask.f32 5376 }
  0x1c   : > { %v548_v56 = vsel %vm311_vm0, %v879_v52, 0  ;;  %v885_v61 = vld [vmem:[%s1323_s2 + $0x18] sm:$0xf]  ;;  %s246_s21 = scalar_lea.vmem [#allocation3], %s863_s13  ;;  %s1031_s7 = scalar_lea.vmem %s1030_s6, 256 }
  0x1d   : > { %v680_v0 = vsel %vm311_vm0, %v885_v61, 0  ;;  %s761_s22 = sshll.u32 %s246_s21, 4  ;;  %s1274_s22 = int_to_ptr.vmem [resolvable:$true] %s761_s22 }
  0x1e   : > { %s1025_s18 = scalar_lea.vmem %s1274_s22, 128  ;;  %p1032_p1 = scmp.lt.s32.totalorder %s1274_s22, %s1030_s6 }
  0x1f   : > { %p1026_p12 = scmp.ne.s32.totalorder %s1274_s22, %s1025_s18  ;;  %p1033_p2 = scmp.lt.s32.totalorder %s1031_s7, %s1025_s18 }
  0x21   : > { %v280_v9 = vld [vmem:[#allocation2] sm:$0xf]  ;;  %v1215_v10 = vld [vmem:[#allocation2 + $0x4] sm:$0xf]  ;;  %p1027_p13 = pnand %p1026_p12, %p1173_p4  ;;  %p1034_p3 = por %p1033_p2, %p1032_p1 }
  0x22   : > { %v402_v11 = vld [vmem:[#allocation2] sm:$0xe]  ;;  %v869_v12 = vcombine.low %v280_v9, %v1215_v10  ;;  %v1019_v13 = vld [vmem:[#allocation2 + $0x8] ss:$0 sps:$4 sm:$0x11]  }
  0x23   : > { %v874_v15 = vcombine.low %v402_v11, %v1215_v10  ;;  %v1223_v17 = vld [vmem:[#allocation2 + $0x8] ss:$0 sps:$4 sm:$0x33]   ;;  %v303_v20 = vshll.u32 %v1019_v13, 16  ;;  %v534_v21 = vld [vmem:[#allocation2] sm:$0xc]  ;;  %p1028_p0 = pneg %p1027_p13 }
  0x24   : > { %v296_v18 = vshrl.u32 %v869_v12, 16  ;;  %v298_v19 = vshll.u32 %v869_v12, 16  ;;  %926 = vmatmul.mubr.msk.bf16.vlgmr.msra.gmra.mxu1 %vm307_vm3, %v869_v12  ;;  %v477_v24 = vshrl.u32 %v1223_v17, 16  ;;  %v480_v27 = vshll.u32 %v1223_v17, 16  ;;  %v666_v60 = vld [vmem:[#allocation2] sm:$0x8] }
  0x25   : > { %936 = vmatpush3.bf16.msra.mxu1 %v489_v14  ;;  %937 = vmatprep.mubr.msk.bf16.mxu1 %vm1104_vm1, %v1103_v2  ;;  %v469_v22 = vshrl.u32 %v874_v15, 16  ;;  %v472_v23 = vshll.u32 %v874_v15, 16  ;;  %v305_v26 = vrot.slane %v303_v20, 1  ;;  %v880_v28 = vcombine.low %v534_v21, %v1215_v10  ;;  %v1023_v29 = vld [vmem:[#allocation2 + $0x8] ss:$0 sps:$4 sm:$0x77]   ;;  %p1035_p5 = pnand %p1034_p3, %p1028_p0 }
  0x26   : > { %v300_v25 = vrot.slane %v298_v19, 1  ;;  %947 = vmatprep.subr.bf16.mxu1 %v1103_v2  ;;  %v479_v32 = vrot.slane %v477_v24, 1  ;;  %v482_v35 = vrot.slane %v480_v27, 2  ;;  %v609_v40 = vshrl.u32 %v1023_v29, 16 }
  0x27   : > { %v471_v30 = vrot.slane %v469_v22, 1  ;;  %v474_v31 = vrot.slane %v472_v23, 2  ;;  %v601_v38 = vshrl.u32 %v880_v28, 16  ;;  %v604_v39 = vshll.u32 %v880_v28, 16 }
  0x28   : > { %v301_v33 = vor.u32 %v300_v25, %v296_v18  ;;  %v483_v42 = vor.u32 %v482_v35, %v479_v32  ;;  %v612_v43 = vshll.u32 %v1023_v29, 16  ;;  %v611_v47 = vrot.slane %v609_v40, 2 }
  0x29   : > { %v475_v37 = vor.u32 %v474_v31, %v471_v30  ;;  %v603_v45 = vrot.slane %v601_v38, 2  ;;  %v606_v46 = vrot.slane %v604_v39, 3  ;;  %v409_v48 = vrot.slane %v874_v15, 1  ;;  %v888_v38 = vld [vmem:[%s1324_s3] ss:$0 sm:$0xff] }
  0x2a   : > { %v306_v41 = vsel %vm294_vm4, %v301_v33, %v305_v26  ;;  %v410_v49 = vrot.slane %v1019_v13, 1  ;;  %v614_v51 = vrot.slane %v612_v43, 3  ;;  %v541_v58 = vrot.slane %v880_v28, 2 }
  0x2b   : > { %920 = vmatmul.mubr.msk.bf16.vlgmr.msra.gmra.mxu0 %vm307_vm3, %v306_v41  ;;  %v484_v50 = vsel %vm467_vm5, %v475_v37, %v483_v42  ;;  %v607_v53 = vor.u32 %v606_v46, %v603_v45  ;;  %v542_v59 = vrot.slane %v1223_v17, 2  ;;  %v886_v63 = vcombine.low %v666_v60, %v1215_v10 }
  0x2c   : > { %930 = vmatpush3.bf16.msra.mxu0 %v416_v34  ;;  %931 = vmatprep.mubr.msk.bf16.mxu0 %vm1104_vm1, %v1103_v2  ;;  %v615_v54 = vor.u32 %v614_v51, %v611_v47  ;;  %v411_v55 = vsel %vm408_vm6, %v409_v48, %v410_v49  ;;  %v674_v3 = vrot.slane %v1023_v29, 3 }
  0x2d   : > { %941 = vmatprep.subr.bf16.mxu0 %v1103_v2  ;;  %938 = vmatmul.mubr.msk.bf16.vlgmr.msra.gmra.mxu1 %vm307_vm3, %v484_v50  ;;  %v543_v62 = vsel %vm540_vm8, %v541_v58, %v542_v59  ;;  %v673_v1 = vrot.slane %v886_v63, 3 }
  0x2e   : > { %948 = vmatpush3.bf16.msra.mxu1 %v621_v44  ;;  %949 = vmatprep.mubr.msk.bf16.mxu1 %vm1104_vm1, %v1103_v2  ;;  %v616_v57 = vsel %vm599_vm7, %v607_v53, %v615_v54 }
  0x2f   : > { %v675_v4 = vsel %vm672_vm9, %v673_v1, %v674_v3 }
  0x33   : > { %932 = vmatmul.mubr.msk.bf16.vlgmr.msra.gmra.mxu0 %vm307_vm3, %v411_v55 }
  0x34   : > { %942 = vmatpush3.bf16.msra.mxu0 %v548_v56  ;;  %943 = vmatprep.mubr.msk.bf16.mxu0 %vm1104_vm1, %v1103_v2 }
  0x35   : > { %953 = vmatprep.subr.bf16.mxu0 %v1103_v2  ;;  %950 = vmatmul.mubr.msk.bf16.vlgmr.msra.gmra.mxu1 %vm307_vm3, %v616_v57 }
  0x3b   : > { %944 = vmatmul.mubr.msk.bf16.vlgmr.msra.gmra.mxu0 %vm307_vm3, %v543_v62 }
  0x3c   : > { %954 = vmatpush3.bf16.msra.mxu0 %v680_v0  ;;  %955 = vmatprep.mubr.msk.bf16.mxu0 %vm1104_vm1, %v1103_v2 }
  0x43   : > { %956 = vmatmul.mubr.msk.bf16.vlgmr.msra.gmra.mxu0 %vm307_vm3, %v675_v4 }
  0xe4   : > { %v395_v5 = vpop.f32.mrf.mxu1 }
  0xe6   : > { %v927_v6 = vpop.f32.mrf.mxu1 }
  0xe8   : > { %v398_v7 = vpop.f32.mrf.mxu1 }
  0xea   : > { %v928_v8 = vpop.f32.mrf.mxu1 }
  0xeb   : > { %v349_v9 = vpop.f32.mrf.mxu0 }
  0xec   : > { %v396_v19 = vadd.f32 %v395_v5, %v349_v9 }
  0xed   : > { %v921_v10 = vpop.f32.mrf.mxu0  ;;  %v525_v11 = vpop.f32.mrf.mxu1 }
  0xef   : > { %v352_v12 = vpop.f32.mrf.mxu0  ;;  %v939_v13 = vpop.f32.mrf.mxu1 }
  0xf0   : > { %v399_v25 = vadd.f32 %v398_v7, %v352_v12 }
  0xf1   : > { %v922_v14 = vpop.f32.mrf.mxu0  ;;  %v528_v15 = vpop.f32.mrf.mxu1 }
  0xf3   : > { %v452_v16 = vpop.f32.mrf.mxu0  ;;  %v940_v17 = vpop.f32.mrf.mxu1 }
  0xf4   : > { %v459_v22 = vadd.f32 %v452_v16, %v396_v19 }
  0xf5   : > { %v933_v2 = vpop.f32.mrf.mxu0  ;;  %v657_v18 = vpop.f32.mrf.mxu1 }
  0xf6   : > { %v532_v28 = vadd.f32 %v525_v11, %v459_v22 }
  0xf7   : > { %v455_v20 = vpop.f32.mrf.mxu0  ;;  %v951_v21 = vpop.f32.mrf.mxu1 }
  0xf8   : > { %v460_v29 = vadd.f32 %v455_v20, %v399_v25 }
  0xf9   : > { %v934_v23 = vpop.f32.mrf.mxu0  ;;  %v660_v24 = vpop.f32.mrf.mxu1 }
  0xfa   : > { %v533_v33 = vadd.f32 %v528_v15, %v460_v29 }
  0xfb   : > { %v584_v26 = vpop.f32.mrf.mxu0  ;;  %v952_v27 = vpop.f32.mrf.mxu1 }
  0xfc   : > { %v591_v31 = vadd.f32 %v584_v26, %v532_v28 }
  0xfd   : > { %v945_v30 = vpop.f32.mrf.mxu0 }
  0xfe   : > { %v664_v35 = vadd.f32 %v657_v18, %v591_v31 }
  0xff   : > { %v587_v32 = vpop.f32.mrf.mxu0 }
 0x100   : > { %v592_v36 = vadd.f32 %v587_v32, %v533_v33 }
 0x101   : > { %v946_v34 = vpop.f32.mrf.mxu0 }
 0x102   : > { %v665_v41 = vadd.f32 %v660_v24, %v592_v36 }
 0x103   : > { %v716_v37 = vpop.f32.mrf.mxu0 }
 0x104   : > { %v723_v39 = vadd.f32 %v716_v37, %v664_v35 }
 0x105   : > { %v957_v40 = vpop.f32.mrf.mxu0 }
 0x106   : > { %v732_v42 = vadd.f32 %v888_v38, %v723_v39 }
 0x107   : > { %v719_v43 = vpop.f32.mrf.mxu0 }
 0x108   : > { %v899_v44 = vpack.c.bf16 %v732_v42, %v732_v42  ;;  %v724_v45 = vadd.f32 %v719_v43, %v665_v41 }
 0x109   : > { %v958_v46 = vpop.f32.mrf.mxu0 }
 0x10a   : > { %743 = vst.msk [vmem:[%s246_s21] sm:$0xf] %vm742_vm10, %v899_v44  ;;  %v733_v47 = vadd.f32 %v888_v38, %v724_v45 }
 0x10c   : > { %v900_v48 = vpack.c.bf16 %v733_v47, %v733_v47 }
 0x10e   : > { %744 = vst.msk [vmem:[%s246_s21 + $0x4] sm:$0xf] %vm742_vm10, %v900_v48 }
 0x10f   : > { %1038 = shalt.err (!%p1035_p5)
}
 0x110   : > { %s1039_s8 = scalar_lea.hbm %s1272_s29, 128  ;;  %s1043_s11 = scalar_lea.hbm %s1325_s4, 256 }
 0x111   : > { %p1040_p6 = scmp.ne.s32.totalorder %s1272_s29, %s1039_s8  ;;  %p1044_p10 = scmp.lt.s32.totalorder %s1272_s29, %s1325_s4 }
 0x112   : > { %p1045_p11 = scmp.lt.s32.totalorder %s1043_s11, %s1039_s8 }
 0x113   : > { %p1041_p7 = pnand %p1040_p6, %p1173_p4 }
 0x114   : > { %p1046_p12 = por %p1045_p11, %p1044_p10 }
 0x115   : > { %p1042_p9 = pneg %p1041_p7 }
 0x117   : > { %p1047_p13 = pnand %p1046_p12, %p1042_p9 }
 0x119   : > { %1050 = shalt.err (!%p1047_p13)
}
 0x11a   : > { %s1106_s14 = smov 64   ;;  %s1107_s21 = smov 4  }
 0x11b   : > { %959 = dma.vmem_to_hbm [thread:$0]  (%p1173_p4), %s1274_s22, 128, %s1272_s29, %s1276_s30, %s1106_s14, %s1106_s14, %s1107_s21  }
 0x11c PF: > { %p965_p0 = scmp.ge.s32.totalorder %s1101_s20, 2  ;;  %s776_s24 = sand.u32 1, %s1081_s15  }
 0x11d   : > { %s777_s26 = scalar_lea.sflag [#allocation4], %s776_s24 }
 0x11e   : > { %p962_p1 = pnand %p965_p0, %p1180_p8 }
 0x120   : > { %p963_p2 = pneg %p962_p1 }
 0x122   : > { %1076 = dma.done.wait (%p963_p2), %s777_s26, 128  }
 0x123   : > { %1078 = vsyncadd (%p963_p2), %s777_s26, 4294967168  ;;  %s17_s20 = sadd.s32 1, %s1101_s20   ;;  %s1328_s15 = smov %s1085_s16 }
 0x124   : > { %p14_p3 = scmp.ge.s32.totalorder %s17_s20, 4   ;;  %s1329_s16 = smov %s1089_s17 }
 0x125   : > { %s1330_s17 = smov %s1186_s28  ;;  %s1331_s18 = smov %s1097_s19 }
 0x126   : > { %s1332_s19 = smov %s1334_s23  ;;  %16 = sbr.rel (!%p14_p3) target bundleno = 4 (0x4), region = 80 }
 0x12b   :  { %782 = vsyncpa [#allocation4], 1 }
 0x12c   :  { %784 = vsyncpa [#allocation4 + $0x1], 1 }

</bundles_post_ra>
